<compile_context>
chip_gen: v6e
topology: v6e:2x2x1
jax: 0.10.0
libtpu: 0.0.40
codegen_flags: <defaults>
</compile_context>

<pallas_src>
import functools

import jax
import jax.numpy as jnp
from jax.experimental import pallas as pl
from jax.experimental.pallas import tpu as pltpu

_DEFAULT_TM = 512


# ---------------------------------------------------------------------------
# Small helpers
# ---------------------------------------------------------------------------
def _round_up(v, m):
    return (v + m - 1) // m * m


def _sublane_multiple(dtype):
    # f32 -> 8, bf16 -> 16, int8/fp8 -> 32 (sub-32-bit packs along sublanes).
    return {4: 8, 2: 16, 1: 32}.get(jnp.dtype(dtype).itemsize, 8)


def _vmem_capacity_bytes():
    """Physical VMEM of the attached TPU generation (conservative fallback)."""
    try:
        cap = getattr(pltpu.get_tpu_info(), "vmem_capacity_bytes", None)
        if cap:
            return int(cap)
    except Exception:
        pass
    return 64 * 1024 * 1024   # v7x physical VMEM; v5e/v6e have 128 MiB


def _vmem_limit(need_bytes):
    cap = _vmem_capacity_bytes()
    return int(min(max(need_bytes + (4 << 20), 32 << 20), int(cap * 0.9)))


def _choose_out_k_tiles(k_in, n_out, dtype, tn=None, tk=None):
    """Pick (tn, tk) tiles for the (K, Nout) weight: large, lane-aligned,
    generation/VMEM-aware, and with >=2 parallel out-feature tiles when the
    axis would otherwise collapse to one tile (v7x megacore)."""
    itemsize = jnp.dtype(dtype).itemsize
    base = 1024 if itemsize >= 4 else 2048       # same byte footprint per tile
    tn = _round_up(tn if tn is not None else base, 128)
    tk = _round_up(tk if tk is not None else base, 128)

    # Keep the double-buffered working set under ~45% of physical VMEM.
    cap = _vmem_capacity_bytes()

    def need(tn_, tk_):
        return (2 * (_DEFAULT_TM * tk_ + tk_ * tn_ + _DEFAULT_TM * tn_) * itemsize
                + _DEFAULT_TM * tn_ * 4)

    while need(tn, tk) > 0.45 * cap and tk > 256:
        tk = max(256, _round_up(tk // 2, 128))
    while need(tn, tk) > 0.45 * cap and tn > 256:
        tn = max(256, _round_up(tn // 2, 128))

    tn_ = min(tn, _round_up(n_out, 128))
    tk_ = min(tk, _round_up(k_in, 128))

    # v7x has 2 TensorCores sharded over 'parallel' grid axes: split the
    # out-feature axis when it would otherwise be a single tile.
    fp = _round_up(n_out, tn_)
    if fp // tn_ < 2 and fp >= 256 and fp % 256 == 0:
        tn_ = fp // 2
    return tn_, tk_


# ---------------------------------------------------------------------------
# Linear kernels (standard contraction on a pre-transposed (K, Nout) weight)
# ---------------------------------------------------------------------------
def _linear_bias_kernel(x_ref, w_ref, b_ref, o_ref, acc_ref):
    # x_ref: (tm, tk); w_ref: (tk, tn); b_ref: (1, tn) f32; acc_ref: f32 scratch
    k = pl.program_id(2)

    @pl.when(k == 0)
    def _():
        acc_ref[...] = jnp.zeros_like(acc_ref)

    acc_ref[...] += jnp.dot(x_ref[...], w_ref[...],
                            preferred_element_type=jnp.float32)

    @pl.when(k == pl.num_programs(2) - 1)
    def _():
        o_ref[...] = (acc_ref[...] + b_ref[...]).astype(o_ref.dtype)


def _linear_nobias_kernel(x_ref, w_ref, o_ref, acc_ref):
    k = pl.program_id(2)

    @pl.when(k == 0)
    def _():
        acc_ref[...] = jnp.zeros_like(acc_ref)

    acc_ref[...] += jnp.dot(x_ref[...], w_ref[...],
                            preferred_element_type=jnp.float32)

    @pl.when(k == pl.num_programs(2) - 1)
    def _():
        o_ref[...] = acc_ref[...].astype(o_ref.dtype)


@functools.partial(jax.jit, static_argnames=("n_out", "tn", "tk", "tm"))
def pallas_linear(x, w_t, bias2d, *, n_out, tn, tk, tm=_DEFAULT_TM):
    """y = x @ W.T [+ b] using a prepared weight.

    `w_t` is the pre-transposed, pre-padded (Kp, Fp) weight from
    prepare_linear_layer; `bias2d` is the pre-padded (1, Fp) f32 bias or None.
    Only the activation is padded per call.
    """
    N, K = x.shape
    Kp, Fp = w_t.shape
    dtype = x.dtype
    itemsize = jnp.dtype(dtype).itemsize

    sub = _sublane_multiple(dtype)
    tm_ = min(tm, _round_up(N, sub))
    Np = _round_up(N, tm_)

    x_p = x if (Np == N and Kp == K) else jnp.pad(x, ((0, Np - N), (0, Kp - K)))

    grid = (Np // tm_, Fp // tn, Kp // tk)

    in_specs = [
        pl.BlockSpec((tm_, tk), lambda i, j, k: (i, k)),   # activation tile
        pl.BlockSpec((tk, tn), lambda i, j, k: (k, j)),    # (K, Nout) weight tile
    ]
    args = [x_p, w_t]
    if bias2d is not None:
        in_specs.append(pl.BlockSpec((1, tn), lambda i, j, k: (0, j)))
        args.append(bias2d)
        kernel = _linear_bias_kernel
    else:
        kernel = _linear_nobias_kernel

    # Double-buffered x / W / out tiles + f32 accumulator (+ small bias tile).
    need = (2 * (tm_ * tk + tk * tn + tm_ * tn) * itemsize
            + tm_ * tn * 4 + 2 * tn * 4)

    out = pl.pallas_call(
        kernel,
        out_shape=jax.ShapeDtypeStruct((Np, Fp), dtype),
        grid_spec=pltpu.PrefetchScalarGridSpec(
            num_scalar_prefetch=0,
            grid=grid,
            in_specs=in_specs,
            out_specs=pl.BlockSpec((tm_, tn), lambda i, j, k: (i, j)),
            scratch_shapes=[pltpu.VMEM((tm_, tn), jnp.float32)]),
        compiler_params=pltpu.CompilerParams(
            dimension_semantics=("parallel", "parallel", "arbitrary"),
            vmem_limit_bytes=_vmem_limit(need)),
    )(*args)

    return out[:N, :n_out]


# ---------------------------------------------------------------------------
# BatchNorm1d (training-mode batch statistics), two-pass & fully blocked
# ---------------------------------------------------------------------------
def _bn_stats_kernel(y_ref, sum_ref, sq_ref):
    # Accumulate per-feature sum / sum-of-squares over row tiles (f32 outputs
    # are VMEM-resident across the 'arbitrary' reduction axis).
    n = pl.program_id(1)

    @pl.when(n == 0)
    def _():
        sum_ref[...] = jnp.zeros_like(sum_ref)
        sq_ref[...] = jnp.zeros_like(sq_ref)

    y = y_ref[...].astype(jnp.float32)
    sum_ref[...] += jnp.sum(y, axis=0, keepdims=True)
    sq_ref[...] += jnp.sum(y * y, axis=0, keepdims=True)


def _bn_affine_kernel(y_ref, scale_ref, shift_ref, o_ref):
    y = y_ref[...].astype(jnp.float32)
    o_ref[...] = (y * scale_ref[...] + shift_ref[...]).astype(o_ref.dtype)


@functools.partial(jax.jit, static_argnames=("tr", "tf"))
def pallas_batchnorm1d(y, gamma, beta, *, tr=512, tf=1024):
    """Training-mode BatchNorm1d over axis 0 (biased var, eps=1e-5), two-pass."""
    N, F = y.shape
    sub = _sublane_multiple(y.dtype)
    tr_ = min(tr, _round_up(N, sub))
    tf_ = min(tf, _round_up(F, 128))
    Np = _round_up(N, tr_)
    Fp = _round_up(F, tf_)
    itemsize = jnp.dtype(y.dtype).itemsize

    y_p = y if (Np == N and Fp == F) else jnp.pad(y, ((0, Np - N), (0, Fp - F)))

    # --- pass 1: per-feature sum / sumsq (padded rows are zeros) ------------
    need1 = 2 * tr_ * tf_ * itemsize + 4 * tf_ * 4
    sums, sqs = pl.pallas_call(
        _bn_stats_kernel,
        out_shape=(jax.ShapeDtypeStruct((1, Fp), jnp.float32),
                   jax.ShapeDtypeStruct((1, Fp), jnp.float32)),
        grid_spec=pltpu.PrefetchScalarGridSpec(
            num_scalar_prefetch=0,
            grid=(Fp // tf_, Np // tr_),
            in_specs=[pl.BlockSpec((tr_, tf_), lambda j, n: (n, j))],
            out_specs=[pl.BlockSpec((1, tf_), lambda j, n: (0, j)),
                       pl.BlockSpec((1, tf_), lambda j, n: (0, j))]),
        compiler_params=pltpu.CompilerParams(
            dimension_semantics=("parallel", "arbitrary"),
            vmem_limit_bytes=_vmem_limit(need1)),
    )(y_p)

    # --- tiny (1, F) epilogue math in plain JAX ------------------------------
    mean = sums / float(N)
    var = sqs / float(N) - mean * mean            # biased variance (torch fwd)
    g = gamma.astype(jnp.float32)
    b = beta.astype(jnp.float32)
    if Fp != F:
        g = jnp.pad(g, (0, Fp - F))
        b = jnp.pad(b, (0, Fp - F))
    scale = g.reshape(1, Fp) * jax.lax.rsqrt(var + 1e-5)
    shift = b.reshape(1, Fp) - mean * scale

    # --- pass 2: y * scale + shift, blocked over (rows, features) -----------
    # TODO(synk): could alias output onto y_p (input_output_aliases) and keep a
    # bf16 intermediate to cut the extra activation round trip further.
    need2 = 4 * tr_ * tf_ * itemsize
    out = pl.pallas_call(
        _bn_affine_kernel,
        out_shape=jax.ShapeDtypeStruct((Np, Fp), y.dtype),
        grid_spec=pltpu.PrefetchScalarGridSpec(
            num_scalar_prefetch=0,
            grid=(Np // tr_, Fp // tf_),
            in_specs=[pl.BlockSpec((tr_, tf_), lambda i, j: (i, j)),
                      pl.BlockSpec((1, tf_), lambda i, j: (0, j)),
                      pl.BlockSpec((1, tf_), lambda i, j: (0, j))],
            out_specs=pl.BlockSpec((tr_, tf_), lambda i, j: (i, j))),
        compiler_params=pltpu.CompilerParams(
            dimension_semantics=("parallel", "parallel"),
            vmem_limit_bytes=_vmem_limit(need2)),
    )(y_p, scale, shift)

    return out[:N, :F]


# ---------------------------------------------------------------------------
# Module-level wrappers (parameter prep once, cheap forward per call)
# ---------------------------------------------------------------------------
def prepare_linear_layer(weight, bias=None, bn_gamma=None, bn_beta=None,
                         compute_dtype=None, tn=None, tk=None):
    """One-time parameter prep: cast, transpose to (K, Nout), pad to tiles.

    `weight` arrives in the PyTorch (out_features, in_features) layout; the
    cast / transpose / pad HBM traffic is paid exactly once here (not per call).
    """
    n_out, k_in = weight.shape
    w = weight.astype(compute_dtype) if compute_dtype is not None else weight
    tn_, tk_ = _choose_out_k_tiles(k_in, n_out, w.dtype, tn=tn, tk=tk)
    Fp = _round_up(n_out, tn_)
    Kp = _round_up(k_in, tk_)

    w_t = jnp.asarray(w).T                        # (K, Nout)
    if (Kp, Fp) != (k_in, n_out):
        w_t = jnp.pad(w_t, ((0, Kp - k_in), (0, Fp - n_out)))

    params = {"w_t": w_t, "n_out": n_out, "k_in": k_in,
              "tn": tn_, "tk": tk_, "compute_dtype": compute_dtype,
              "bias2d": None, "bn_gamma": None, "bn_beta": None}
    if bias is not None:
        b = bias.astype(jnp.float32)
        if Fp != n_out:
            b = jnp.pad(b, (0, Fp - n_out))
        params["bias2d"] = b.reshape(1, Fp)
    if bn_gamma is not None:
        params["bn_gamma"] = bn_gamma.astype(jnp.float32)
        params["bn_beta"] = bn_beta.astype(jnp.float32)
    return params


def linear_layer_forward(x, params, use_bias=True, use_bn=False, tm=_DEFAULT_TM):
    """Mirror of LinearLayer.forward: y = Linear(x); if use_bn: y = BN(y)."""
    assert x.shape[1] == params["k_in"], "in_features mismatch"
    cd = params["compute_dtype"]
    if cd is not None:
        x = x.astype(cd)
    # nn.Linear is constructed with bias=False when use_bn (or not use_bias).
    bias2d = params["bias2d"] if (use_bias and not use_bn) else None
    y = pallas_linear(x, params["w_t"], bias2d,
                      n_out=params["n_out"], tn=params["tn"],
                      tk=params["tk"], tm=tm)
    if use_bn:
        # TODO(synk): running_mean/running_var buffers are not tracked; only the
        # training-mode batch-statistic normalization (what forward() outputs).
        y = pallas_batchnorm1d(y, params["bn_gamma"], params["bn_beta"])
    return y


# ---------------------------------------------------------------------------
# Main
# ---------------------------------------------------------------------------
if __name__ == "__main__":
    key = jax.random.PRNGKey(0)
    kx, kw, kb, kx2, kw2, kb2 = jax.random.split(key, 6)

    # --- aligned f32 case ----------------------------------------------------
    in_f, out_f, batch = 256, 256, 16
    bound = 1.0 / (in_f ** 0.5)
    weight = jax.random.uniform(kw, (out_f, in_f), minval=-bound, maxval=bound,
                                dtype=jnp.float32)
    bias = jax.random.uniform(kb, (out_f,), minval=-bound, maxval=bound,
                              dtype=jnp.float32)
    x = jax.random.normal(kx, (batch, in_f), dtype=jnp.float32)

    params = prepare_linear_layer(
        weight, bias,
        bn_gamma=jnp.ones((out_f,), jnp.float32),
        bn_beta=jnp.zeros((out_f,), jnp.float32))

    # Default config: use_bias=True, use_bn=False
    y = jax.block_until_ready(linear_layer_forward(x, params))
    y_ref = x @ weight.T + bias
    assert jnp.allclose(y, y_ref, atol=1e-5, rtol=1e-5), "linear mismatch"

    # use_bn=True path (linear has no bias; training-mode batch statistics)
    y_bn = jax.block_until_ready(linear_layer_forward(x, params, use_bn=True))
    y_lin = x @ weight.T
    mean = y_lin.mean(axis=0, keepdims=True)
    var = ((y_lin - mean) ** 2).mean(axis=0, keepdims=True)
    y_bn_ref = (y_lin - mean) / jnp.sqrt(var + 1e-5)
    assert jnp.allclose(y_bn, y_bn_ref, atol=1e-4, rtol=1e-4), "bn mismatch"

    # --- ragged (non tile-aligned) shapes: exercises the padding path --------
    in2, out2, b2 = 200, 120, 10
    bound2 = 1.0 / (in2 ** 0.5)
    w2 = jax.random.uniform(kw2, (out2, in2), minval=-bound2, maxval=bound2,
                            dtype=jnp.float32)
    bb2 = jax.random.uniform(kb2, (out2,), minval=-bound2, maxval=bound2,
                             dtype=jnp.float32)
    x2 = jax.random.normal(kx2, (b2, in2), dtype=jnp.float32)
    params2 = prepare_linear_layer(w2, bb2)
    y2 = jax.block_until_ready(linear_layer_forward(x2, params2))
    y2_ref = x2 @ w2.T + bb2
    assert jnp.allclose(y2, y2_ref, atol=1e-5, rtol=1e-5), "ragged linear mismatch"

    # --- bf16 compute path (weight cast / transposed / padded ONCE) ----------
    params_bf = prepare_linear_layer(weight, bias, compute_dtype=jnp.bfloat16)
    y_bf = jax.block_until_ready(linear_layer_forward(x, params_bf))
    y_bf_ref = jnp.dot(x.astype(jnp.bfloat16), weight.astype(jnp.bfloat16).T,
                       preferred_element_type=jnp.float32) + bias
    assert jnp.allclose(y_bf.astype(jnp.float32), y_bf_ref,
                        atol=2e-2, rtol=2e-2), "bf16 linear mismatch"

    # --- use_bias=False path (bias-free epilogue specialization) -------------
    y_nb = jax.block_until_ready(linear_layer_forward(x, params, use_bias=False))
    assert jnp.allclose(y_nb, y_lin, atol=1e-5, rtol=1e-5), "no-bias mismatch"

    print("KERNEL_OK")
</pallas_src>

<mosaic_0001>
module attributes {stable_mosaic.version = 11 : i64} {
  func.func @_linear_bias_kernel(%arg0: i32, %arg1: i32, %arg2: i32, %arg3: memref<16x256xf32, #tpu.memory_space<vmem>>, %arg4: memref<256x128xf32, #tpu.memory_space<vmem>>, %arg5: memref<1x128xf32, #tpu.memory_space<vmem>>, %arg6: memref<16x128xf32, #tpu.memory_space<vmem>>, %arg7: memref<16x128xf32, #tpu.memory_space<vmem>>) attributes {dimension_semantics = [#tpu.dimension_semantics<parallel>, #tpu.dimension_semantics<parallel>, #tpu.dimension_semantics<arbitrary>], iteration_bounds = array<i64: 1, 2, 1>, scalar_prefetch = 0 : i64, scratch_operands = 1 : i64, tpu.core_type = #tpu.core_type<tc>, window_params = [{transform_indices = @transform_0, window_bounds = array<i64: 16, 256>}, {transform_indices = @transform_1, window_bounds = array<i64: 256, 128>}, {transform_indices = @transform_2, window_bounds = array<i64: 1, 128>}, {transform_indices = @transform_3, window_bounds = array<i64: 16, 128>}]} {
    %c0_i32 = arith.constant 0 : i32
    %0 = arith.cmpi eq, %arg2, %c0_i32 : i32
    %1 = arith.extui %0 : i1 to i32
    %c0_i32_0 = arith.constant 0 : i32
    %2 = arith.cmpi ne, %1, %c0_i32_0 : i32
    scf.if %2 {
      %cst_10 = arith.constant 0.000000e+00 : f32
      %12 = vector.broadcast %cst_10 : f32 to vector<16x128xf32>
      %c0_11 = arith.constant 0 : index
      %c0_12 = arith.constant 0 : index
      %13 = vector.load %arg7[%c0_11, %c0_12] : memref<16x128xf32, #tpu.memory_space<vmem>>, vector<16x128xf32>
      tpu.vector_store %arg7[%c0_11, %c0_12], %12 {strides = array<i32>} : memref<16x128xf32, #tpu.memory_space<vmem>>, vector<16x128xf32>,
    } else {
    }
    %c0 = arith.constant 0 : index
    %c0_1 = arith.constant 0 : index
    %3 = vector.load %arg7[%c0, %c0_1] : memref<16x128xf32, #tpu.memory_space<vmem>>, vector<16x128xf32>
    %c0_2 = arith.constant 0 : index
    %c0_3 = arith.constant 0 : index
    %4 = vector.load %arg3[%c0_2, %c0_3] : memref<16x256xf32, #tpu.memory_space<vmem>>, vector<16x256xf32>
    %c0_4 = arith.constant 0 : index
    %c0_5 = arith.constant 0 : index
    %5 = vector.load %arg4[%c0_4, %c0_5] : memref<256x128xf32, #tpu.memory_space<vmem>>, vector<256x128xf32>
    %cst = arith.constant dense<0.000000e+00> : vector<16x128xf32>
    %6 = tpu.matmul %4, %5, %cst {dimension_numbers = #tpu.dot_dimension_numbers<[1], [0], [0], [1], [0, 0, 1, 1], [], []>} : vector<16x256xf32>, vector<256x128xf32>, vector<16x128xf32> -> vector<16x128xf32>
    %7 = arith.addf %3, %6 : vector<16x128xf32>
    %c0_6 = arith.constant 0 : index
    %c0_7 = arith.constant 0 : index
    %8 = vector.load %arg7[%c0_6, %c0_7] : memref<16x128xf32, #tpu.memory_space<vmem>>, vector<16x128xf32>
    tpu.vector_store %arg7[%c0_6, %c0_7], %7 {strides = array<i32>} : memref<16x128xf32, #tpu.memory_space<vmem>>, vector<16x128xf32>,
    %c0_i32_8 = arith.constant 0 : i32
    %9 = arith.cmpi eq, %arg2, %c0_i32_8 : i32
    %10 = arith.extui %9 : i1 to i32
    %c0_i32_9 = arith.constant 0 : i32
    %11 = arith.cmpi ne, %10, %c0_i32_9 : i32
    scf.if %11 {
      %c0_10 = arith.constant 0 : index
      %c0_11 = arith.constant 0 : index
      %12 = vector.load %arg7[%c0_10, %c0_11] : memref<16x128xf32, #tpu.memory_space<vmem>>, vector<16x128xf32>
      %c0_12 = arith.constant 0 : index
      %c0_13 = arith.constant 0 : index
      %13 = vector.load %arg5[%c0_12, %c0_13] : memref<1x128xf32, #tpu.memory_space<vmem>>, vector<1x128xf32>
      %14 = vector.broadcast %13 : vector<1x128xf32> to vector<16x128xf32>
      %15 = arith.addf %12, %14 : vector<16x128xf32>
      %c0_14 = arith.constant 0 : index
      %c0_15 = arith.constant 0 : index
      %16 = vector.load %arg6[%c0_14, %c0_15] : memref<16x128xf32, #tpu.memory_space<vmem>>, vector<16x128xf32>
      tpu.vector_store %arg6[%c0_14, %c0_15], %15 {strides = array<i32>} : memref<16x128xf32, #tpu.memory_space<vmem>>, vector<16x128xf32>,
    } else {
    }
    return
  }
  func.func @transform_0(%arg0: i32, %arg1: i32, %arg2: i32) -> (i32, i32) {
    %c0_i32 = arith.constant 0 : i32
    return %arg0, %arg2 : i32, i32
  }
  func.func @transform_1(%arg0: i32, %arg1: i32, %arg2: i32) -> (i32, i32) {
    %c0_i32 = arith.constant 0 : i32
    return %arg2, %arg1 : i32, i32
  }
  func.func @transform_2(%arg0: i32, %arg1: i32, %arg2: i32) -> (i32, i32) {
    %c0_i32 = arith.constant 0 : i32
    %c0_i32_0 = arith.constant 0 : i32
    return %c0_i32, %arg1 : i32, i32
  }
  func.func @transform_3(%arg0: i32, %arg1: i32, %arg2: i32) -> (i32, i32) {
    %c0_i32 = arith.constant 0 : i32
    return %arg0, %arg1 : i32, i32
  }
}

</mosaic_0001>

<bundles_post_ra>
// kernel: pallas_linear.1
= control target key start
LH: loop header
LB: loop body
LE: loop exit
PB: predicated region body
PF: predicated region fallthrough
CT: control target
= control target key end

     0   :  { %8 = vsyncpa [#allocation4], 0  ;;  %s1083_s0 = inlined_call_operand.hbm [shape: f32[16,256], index: 0, kind: input, shape index: {}]   ;;  %s1084_s1 = inlined_call_operand.hbm [shape: f32[256,256], index: 1, kind: input, shape index: {}]   ;;  %s1085_s2 = inlined_call_operand.vmem [shape: f32[1,256], index: 2, kind: input, shape index: {}]   ;;  %s1086_s3 = inlined_call_operand.hbm [shape: f32[16,256], index: 3, kind: output, shape index: {}]  }
   0x1   :  { %9 = vsyncpa [#allocation7], 0 }
   0x2   :  { %11 = vsyncpa [#allocation7 + $0x1], 0 }
   0x3   :  { %12 = vsyncpa [#allocation5], 0 }
   0x4   :  { %14 = vsyncpa [#allocation5 + $0x1], 0  ;;  %s865_s12 = smov 0   ;;  %s867_s13 = smov 0  }
   0x5   :  { %s869_s14 = smov 0   ;;  %s871_s15 = smov 0  }
   0x6   :  { %s873_s16 = smov 0   ;;  %s875_s17 = smov 0  }
   0x7 LB: > { %1092 = sst [smem:[#allocation12_spill]] %s833_s17  ;;  %s529_s18 = sadd.s32 4294967295, %s833_s17   ;;  %s833_s17 = sphi %s875_s17, %s20_s17   ;;  %s829_s16 = sphi %s873_s16, %s1112_s16   ;;  %s825_s15 = sphi %s871_s15, %s1111_s15   ;;  %s821_s14 = sphi %s869_s14, %s1110_s14   ;;  %s817_s13 = sphi %s867_s13, %s1109_s13   ;;  %s813_s12 = sphi %s865_s12, %s1108_s12  }
   0x8   : > { %s530_s19 = sadd.s32 4294967294, %s833_s17   ;;  %p83_p0 = scmp.ne.s32.totalorder %s821_s14, %s817_s13 }
   0x9   : > { %p84_p1 = scmp.eq.s32.totalorder %s833_s17, 0  ;;  %p89_p2 = scmp.ne.s32.totalorder %s817_s13, %s813_s12 }
   0xa   : > { %p902_p3 = scmp.eq.s32.totalorder %s529_s18, 0  ;;  %p141_p5 = scmp.eq.s32.totalorder %s529_s18, 1 }
   0xb   : > { %p906_p4 = por %p84_p1, %p83_p0  ;;  %p147_p7 = scmp.eq.s32.totalorder %s530_s19, 1 }
   0xc   : > { %p912_p6 = por %p902_p3, %p89_p2  ;;  %p916_p8 = por %p141_p5, %p83_p0 }
   0xd   : > { %p531_p9 = scmp.ge.s32.totalorder %s833_s17, 1  ;;  %p921_p10 = por %p147_p7, %p89_p2 }
   0xe   : > { %s1095_s22 = scalar_select %p912_p6, 1, 0 }
   0xf   : > { %s1096_s23 = scalar_select %p916_p8, 1, 0 }
  0x10   : > { %s1097_s24 = scalar_select %p921_p10, 1, 0 }
  0x11   : > { %p154_p11 = scmp.lt.s32.totalorder %s833_s17, 3  ;;  %s835_s26 = smov [#allocation3]  }
  0x12   : > { %1098 = sst [smem:[#allocation13_spill]] %s1097_s24  ;;  %s172_s27 = sshll.u32 %s835_s26, 4  ;;  %s173_s27 = int_to_ptr.vmem [resolvable:$true] %s172_s27 }
  0x13   : > { %p926_p12 = pnand %p531_p9, %p154_p11  ;;  %p636_p1 = scmp.lt.s32.totalorder %s833_s17, 2 }
  0x14   : > { %s35_s30 = sadd.s32 1, %s829_s16  ;;  %s706_s4 = scalar_lea.vmem %s173_s27, 512 }
  0x15   : > { %p623_p13 = pneg %p926_p12  ;;  %p942_p2 = pnand %p636_p1, %p906_p4 }
  0x16   : > { %p707_p9 = scmp.ne.s32.totalorder %s173_s27, %s706_s4  ;;  %p714_p0 = scmp.lt.s32.totalorder %s173_s27, %s173_s27 }
  0x17   : > { %p936_p5 = pnand %p623_p13, %p902_p3  ;;  %p715_p8 = scmp.lt.s32.totalorder %s706_s4, %s706_s4 }
  0x19   : > { %p697_p7 = pneg %p936_p5  ;;  %p716_p6 = por %p715_p8, %p714_p0 }
  0x1b   : > { %p709_p11 = pnand %p707_p9, %p697_p7 }
  0x1d   : > { %p710_p10 = pneg %p709_p11 }
  0x1f   : > { %p717_p13 = pnand %p716_p6, %p710_p10 }
  0x21   : > { %720 = shalt.err (!%p717_p13)
}
  0x22   : > { %s836_s5 = smov 256   ;;  %s837_s6 = smov 16  }
  0x23   : > { %626 = dma.hbm_to_vmem [thread:$0]  (!%p936_p5), %s1083_s0, 512, %s173_s27, [#allocation4], %s836_s5, %s836_s5, %s837_s6  }
  0x24   : > { %p37_p4 = scmp.ge.s32.totalorder %s35_s30, 2  ;;  %s76_s9 = sadd.s32 1, %s821_s14 }
  0x25   : > { %s186_s10 = sand.u32 1, %s821_s14   ;;  %s535_s19 = sshll.u32 %s829_s16, 7 }
  0x26   : > { %s1114_s30 = smov (%p37_p4, %s35_s30), 0  ;;  %s534_s11 = sshll.u32 %s186_s10, 8 }
  0x27   : > { %s72_s18 = ssub.s32 %s829_s16, %s1114_s30  ;;  %s198_s28 = scalar_lea.hbm %s1084_s1, %s535_s19 }
  0x28   : > { %p74_p6 = scmp.eq.s32.totalorder %s72_s18, 0  ;;  %s190_s4 = scalar_lea.vmem [#allocation6], %s534_s11 }
  0x29   : > { %s199_s17 = sshll.u32 %s190_s4, 4  ;;  %s187_s27 = scalar_lea.sflag [#allocation7], %s186_s10  ;;  %s200_s17 = int_to_ptr.vmem [resolvable:$true] %s199_s17 }
  0x2a   : > { %s967_s24 = scalar_select %p74_p6, %s821_s14, %s76_s9  }
  0x2b   : > { %p723_p8 = pneg %p942_p2  ;;  %s734_s6 = scalar_lea.vmem %s200_s17, 4096 }
  0x2c   : > { %p735_p10 = scmp.ne.s32.totalorder %s200_s17, %s734_s6  ;;  %s838_s7 = smov [#allocation6]  }
  0x2d   : > { %s739_s8 = sshll.u32 %s838_s7, 4  ;;  %s740_s8 = int_to_ptr.vmem [resolvable:$false] %s739_s8 }
  0x2e   : > { %p737_p0 = pnand %p735_p10, %p723_p8  ;;  %s741_s18 = scalar_lea.vmem %s740_s8, 8192 }
  0x2f   : > { %p742_p5 = scmp.lt.s32.totalorder %s200_s17, %s740_s8  ;;  %p743_p7 = scmp.lt.s32.totalorder %s741_s18, %s734_s6 }
  0x30   : > { %p738_p1 = pneg %p737_p0 }
  0x31   : > { %p744_p9 = por %p743_p7, %p742_p5 }
  0x33   : > { %p745_p11 = pnand %p744_p9, %p738_p1 }
  0x35   : > { %748 = shalt.err (!%p745_p11)
}
  0x36   : > { %s839_s11 = smov 128   ;;  %s840_s9 = smov 8  }
  0x37   : > { %630 = dma.hbm_to_vmem [thread:$0]  (!%p942_p2), %s198_s28, 4096, %s200_s17, %s187_s27, %s836_s5, %s839_s11, %s840_s9  }
  0x38   : > { %217 = sbr.rel (%p926_p12) target bundleno = 314 (0x13a), region = 32 }
  0x3d   : > { %800 = dma.done.wait (%p902_p3), [#allocation4], 512  }
  0x3e   : > { %802 = vsyncadd (%p902_p3), [#allocation4], 4294966784  ;;  %s981_s10 = sand.u32 1, %s817_s13   ;;  %p1102_p2 = scmp.ne.s32.totalorder %s1095_s22, 0 }
  0x3f   : > { %s538_s19 = sshll.u32 %s981_s10, 8  ;;  %s224_s21 = scalar_lea.sflag [#allocation7], %s981_s10 }
  0x40   : > { %s985_s29 = scalar_lea.vmem [#allocation6], %s538_s19 }
  0x41   : > { %804 = dma.done.wait (%p1102_p2), %s224_s21, 4096  }
  0x42   : > { %806 = vsyncadd (%p1102_p2), %s224_s21, 4294963200  ;;  %v303_v0 = vld [vmem:[%s985_s29 + $0xf8] sm:$0xff]  ;;  %v302_v2 = vld [vmem:[%s985_s29 + $0xf0] sm:$0xff]  ;;  %p256_p3 = scmp.lt.s32.totalorder %s825_s15, 1  ;;  %s539_s17 = sshll.u32 %s981_s10, 4 }
  0x43   : > { %v287_v1 = vld [vmem:[%s985_s29 + $0x78] sm:$0xff]  ;;  %545 = vmatprep.subr.mxu0 %v303_v0  ;;  %583 = vmatprep.subr.mxu1 %v303_v0  ;;  %v286_v3 = vld [vmem:[%s985_s29 + $0x70] sm:$0xff]  ;;  %v301_v4 = vld [vmem:[%s985_s29 + $0xe8] sm:$0xff]  ;;  %s252_s26 = scalar_lea.vmem [#allocation8], %s539_s17  ;;  %s542_s4 = sshll.u32 %s825_s15, 7 }
  0x44   : > { %546 = vmatpush3.msra.mxu0 %v287_v1  ;;  %599 = vmatpush3.msra.mxu1 %v287_v1  ;;  %v285_v5 = vld [vmem:[%s985_s29 + $0x68] sm:$0xff]  ;;  %v300_v6 = vld [vmem:[%s985_s29 + $0xe0] sm:$0xff]  ;;  %v299_v8 = vld [vmem:[%s985_s29 + $0xd8] sm:$0xff]  ;;  %s257_s20 = scalar_select %p256_p3, %s825_s15, 1 }
  0x45   : > { %547 = vmatprep.subr.mxu0 %v302_v2  ;;  %584 = vmatprep.subr.mxu1 %v302_v2  ;;  %v284_v7 = vld [vmem:[%s985_s29 + $0x60] sm:$0xff]  ;;  %v283_v9 = vld [vmem:[%s985_s29 + $0x58] sm:$0xff]  ;;  %v298_v10 = vld [vmem:[%s985_s29 + $0xd0] sm:$0xff]  ;;  %s415_s28 = sshll.u32 %s252_s26, 4  ;;  %s1035_s7 = scalar_lea.hbm %s1086_s3, %s542_s4  ;;  %s1030_s28 = int_to_ptr.vmem [resolvable:$true] %s415_s28 }
  0x46   : > { %548 = vmatpush3.msra.mxu0 %v286_v3  ;;  %600 = vmatpush3.msra.mxu1 %v286_v3  ;;  %v282_v11 = vld [vmem:[%s985_s29 + $0x50] sm:$0xff]  ;;  %v297_v12 = vld [vmem:[%s985_s29 + $0xc8] sm:$0xff]  ;;  %v296_v14 = vld [vmem:[%s985_s29 + $0xc0] sm:$0xff]  ;;  %s258_s5 = scalar_lea.vmem %s1085_s2, %s257_s20  ;;  %s400_s15 = scalar_lea.sflag [#allocation5], %s981_s10 }
  0x47   : > { %549 = vmatprep.subr.mxu0 %v301_v4  ;;  %585 = vmatprep.subr.mxu1 %v301_v4  ;;  %v281_v13 = vld [vmem:[%s985_s29 + $0x48] sm:$0xff]  ;;  %v280_v15 = vld [vmem:[%s985_s29 + $0x40] sm:$0xff]  ;;  %v295_v16 = vld [vmem:[%s985_s29 + $0xb8] sm:$0xff]  ;;  %s749_s8 = scalar_lea.vmem %s1030_s28, 256  ;;  %p1103_p13 = scmp.ne.s32.totalorder %s1096_s23, 0 }
  0x48   : > { %550 = vmatpush3.msra.mxu0 %v285_v5  ;;  %601 = vmatpush3.msra.mxu1 %v285_v5  ;;  %v279_v17 = vld [vmem:[%s985_s29 + $0x38] sm:$0xff]  ;;  %v294_v18 = vld [vmem:[%s985_s29 + $0xb0] sm:$0xff]  ;;  %v293_v20 = vld [vmem:[%s985_s29 + $0xa8] sm:$0xff]  ;;  %p750_p12 = scmp.ne.s32.totalorder %s1030_s28, %s749_s8  ;;  %s841_s18 = smov [#allocation8]  }
  0x49   : > { %551 = vmatprep.subr.mxu0 %v300_v6  ;;  %586 = vmatprep.subr.mxu1 %v300_v6  ;;  %v278_v19 = vld [vmem:[%s985_s29 + $0x30] sm:$0xff]  ;;  %v277_v21 = vld [vmem:[%s985_s29 + $0x28] sm:$0xff]  ;;  %v292_v22 = vld [vmem:[%s985_s29 + $0xa0] sm:$0xff]  ;;  %s753_s11 = sshll.u32 %s841_s18, 4  ;;  %s754_s11 = int_to_ptr.vmem [resolvable:$false] %s753_s11 }
  0x4a   : > { %552 = vmatpush3.msra.mxu0 %v284_v7  ;;  %602 = vmatpush3.msra.mxu1 %v284_v7  ;;  %v276_v23 = vld [vmem:[%s985_s29 + $0x20] sm:$0xff]  ;;  %v291_v24 = vld [vmem:[%s985_s29 + $0x98] sm:$0xff]  ;;  %v290_v26 = vld [vmem:[%s985_s29 + $0x90] sm:$0xff]  ;;  %p751_p4 = pnand %p750_p12, %p1103_p13  ;;  %s755_s9 = scalar_lea.vmem %s754_s11, 512 }
  0x4b   : > { %553 = vmatprep.subr.mxu0 %v299_v8  ;;  %587 = vmatprep.subr.mxu1 %v299_v8  ;;  %v275_v25 = vld [vmem:[%s985_s29 + $0x18] sm:$0xff]  ;;  %v274_v27 = vld [vmem:[%s985_s29 + $0x10] sm:$0xff]  ;;  %v289_v28 = vld [vmem:[%s985_s29 + $0x88] sm:$0xff]  ;;  %p756_p8 = scmp.lt.s32.totalorder %s1030_s28, %s754_s11  ;;  %p757_p10 = scmp.lt.s32.totalorder %s755_s9, %s749_s8 }
  0x4c   : > { %554 = vmatpush3.msra.mxu0 %v283_v9  ;;  %603 = vmatpush3.msra.mxu1 %v283_v9  ;;  %v273_v29 = vld [vmem:[%s985_s29 + $0x8] sm:$0xff]  ;;  %v288_v30 = vld [vmem:[%s985_s29 + $0x80] sm:$0xff]  ;;  %v271_v33 = vld [vmem:[#allocation3 + $0x18] sm:$0xff]  ;;  %p752_p6 = pneg %p751_p4 }
  0x4d   : > { %555 = vmatprep.subr.mxu0 %v298_v10  ;;  %588 = vmatprep.subr.mxu1 %v298_v10  ;;  %v272_v31 = vld [vmem:[%s985_s29] sm:$0xff]  ;;  %v269_v32 = vld [vmem:[#allocation3 + $0x8] sm:$0xff]  ;;  %v270_v35 = vld [vmem:[#allocation3 + $0x10] sm:$0xff]  ;;  %p758_p0 = por %p757_p10, %p756_p8 }
  0x4e   : > { %556 = vmatpush3.msra.mxu0 %v282_v11  ;;  %604 = vmatpush3.msra.mxu1 %v282_v11  ;;  %v268_v34 = vld [vmem:[#allocation3] sm:$0xff] }
  0x4f   : > { %557 = vmatprep.subr.mxu0 %v297_v12  ;;  %589 = vmatprep.subr.mxu1 %v297_v12  ;;  %v540_v39 = vld [vmem:[%s258_s5] ss:$0 sm:$0xff]  ;;  %p759_p1 = pnand %p758_p0, %p752_p6 }
  0x50   : > { %558 = vmatpush3.msra.mxu0 %v281_v13  ;;  %605 = vmatpush3.msra.mxu1 %v281_v13 }
  0x51   : > { %559 = vmatprep.subr.mxu0 %v296_v14  ;;  %590 = vmatprep.subr.mxu1 %v296_v14 }
  0x52   : > { %560 = vmatpush3.msra.mxu0 %v280_v15  ;;  %606 = vmatpush3.msra.mxu1 %v280_v15 }
  0x53   : > { %561 = vmatprep.subr.mxu0 %v295_v16  ;;  %591 = vmatprep.subr.mxu1 %v295_v16 }
  0x54   : > { %562 = vmatpush3.msra.mxu0 %v279_v17  ;;  %607 = vmatpush3.msra.mxu1 %v279_v17 }
  0x55   : > { %563 = vmatprep.subr.mxu0 %v294_v18  ;;  %592 = vmatprep.subr.mxu1 %v294_v18 }
  0x56   : > { %564 = vmatpush3.msra.mxu0 %v278_v19  ;;  %608 = vmatpush3.msra.mxu1 %v278_v19 }
  0x57   : > { %565 = vmatprep.subr.mxu0 %v293_v20  ;;  %593 = vmatprep.subr.mxu1 %v293_v20 }
  0x58   : > { %566 = vmatpush3.msra.mxu0 %v277_v21  ;;  %609 = vmatpush3.msra.mxu1 %v277_v21 }
  0x59   : > { %567 = vmatprep.subr.mxu0 %v292_v22  ;;  %594 = vmatprep.subr.mxu1 %v292_v22 }
  0x5a   : > { %568 = vmatpush3.msra.mxu0 %v276_v23  ;;  %610 = vmatpush3.msra.mxu1 %v276_v23 }
  0x5b   : > { %569 = vmatprep.subr.mxu0 %v291_v24  ;;  %595 = vmatprep.subr.mxu1 %v291_v24 }
  0x5c   : > { %570 = vmatpush3.msra.mxu0 %v275_v25  ;;  %611 = vmatpush3.msra.mxu1 %v275_v25 }
  0x5d   : > { %571 = vmatprep.subr.mxu0 %v290_v26  ;;  %596 = vmatprep.subr.mxu1 %v290_v26 }
  0x5e   : > { %572 = vmatpush3.msra.mxu0 %v274_v27  ;;  %612 = vmatpush3.msra.mxu1 %v274_v27 }
  0x5f   : > { %573 = vmatprep.subr.mxu0 %v289_v28  ;;  %597 = vmatprep.subr.mxu1 %v289_v28 }
  0x60   : > { %574 = vmatpush3.msra.mxu0 %v273_v29  ;;  %613 = vmatpush3.msra.mxu1 %v273_v29 }
  0x61   : > { %575 = vmatprep.subr.mxu0 %v288_v30  ;;  %598 = vmatprep.subr.mxu1 %v288_v30 }
  0x62   : > { %576 = vmatpush3.msra.mxu0 %v272_v31  ;;  %614 = vmatpush3.msra.mxu1 %v272_v31 }
  0x63   : > { %368 = vmatprep.mubr.f32.mxu0 %v269_v32  ;;  %373 = vmatprep.mubr.f32.mxu1 %v271_v33 }
  0x64   : > { %369 = vmatmul.mubr.f32.vlgmr.msra.gmra.mxu0 %v268_v34  ;;  %374 = vmatmul.mubr.f32.vlgmr.msra.gmra.mxu1 %v270_v35 }
 0x124   : > { %v577_v36 = vpop.f32.mrf.mxu0  ;;  %v580_v37 = vpop.f32.mrf.mxu1 }
 0x126   : > { %v578_v38 = vpop.f32.mrf.mxu0  ;;  %v581_v40 = vpop.f32.mrf.mxu1 }
 0x127   : > { %v579_v41 = vadd.f32 %v578_v38, %v577_v36  ;;  %v582_v42 = vadd.f32 %v581_v40, %v580_v37 }
 0x129   : > { %v395_v43 = vadd.f32 %v579_v41, %v540_v39  ;;  %v396_v44 = vadd.f32 %v582_v42, %v540_v39 }
 0x12b   : > { %397 = vst [vmem:[%s252_s26] sm:$0xff] %v395_v43  ;;  %398 = vst [vmem:[%s252_s26 + $0x8] sm:$0xff] %v396_v44 }
 0x12c   : > { %762 = shalt.err (!%p759_p1)
}
 0x12d   : > { %s763_s19 = scalar_lea.hbm %s1035_s7, 256  ;;  %s767_s17 = scalar_lea.hbm %s1086_s3, 512 }
 0x12e   : > { %p764_p5 = scmp.ne.s32.totalorder %s1035_s7, %s763_s19  ;;  %p768_p11 = scmp.lt.s32.totalorder %s1035_s7, %s1086_s3 }
 0x12f   : > { %p769_p2 = scmp.lt.s32.totalorder %s767_s17, %s763_s19 }
 0x130   : > { %p765_p7 = pnand %p764_p5, %p1103_p13 }
 0x131   : > { %p770_p3 = por %p769_p2, %p768_p11 }
 0x132   : > { %p766_p9 = pneg %p765_p7 }
 0x134   : > { %p771_p12 = pnand %p770_p3, %p766_p9 }
 0x136   : > { %774 = shalt.err (!%p771_p12)
}
 0x137   : > { %s842_s25 = smov 128   ;;  %s843_s5 = smov 256  }
 0x138   : > { %s844_s26 = smov 8  }
 0x139   : > { %621 = dma.vmem_to_hbm [thread:$0]  (%p1103_p13), %s1030_s28, 256, %s1035_s7, %s400_s15, %s842_s25, %s843_s5, %s844_s26  }
 0x13a PF: > { %s1104_s4 = sld [smem:[#allocation13_spill]]  ;;  %s430_s6 = sand.u32 1, %s813_s12  }
 0x13b   : > { %s1105_s27 = sld [smem:[#allocation12_spill]]  ;;  %s431_s8 = scalar_lea.sflag [#allocation5], %s430_s6 }
 0x140   : > { %p1106_p4 = scmp.ne.s32.totalorder %s1104_s4, 0 }
 0x141   : > { %p1107_p6 = scmp.ge.s32.totalorder %s1105_s27, 2 }
 0x143   : > { %p632_p8 = pnand %p1107_p6, %p1106_p4 }
 0x145   : > { %p633_p10 = pneg %p632_p8 }
 0x147   : > { %808 = dma.done.wait (%p633_p10), %s431_s8, 256  }
 0x148   : > { %810 = vsyncadd (%p633_p10), %s431_s8, 4294967040  ;;  %s20_s17 = sadd.s32 1, %s1105_s27   ;;  %s1108_s12 = smov %s817_s13 }
 0x149   : > { %p17_p0 = scmp.ge.s32.totalorder %s20_s17, 4   ;;  %s1109_s13 = smov %s821_s14 }
 0x14a   : > { %s1110_s14 = smov %s967_s24  ;;  %s1111_s15 = smov %s829_s16 }
 0x14b   : > { %s1112_s16 = smov %s1114_s30  ;;  %19 = sbr.rel (!%p17_p0) target bundleno = 7 (0x7), region = 94 }
 0x150   :  { %436 = vsyncpa [#allocation4], 1 }
 0x151   :  { %438 = vsyncpa [#allocation4 + $0x1], 1 }
 0x152   :  { %439 = vsyncpa [#allocation7], 1 }
 0x153   :  { %441 = vsyncpa [#allocation7 + $0x1], 1 }
 0x154   :  { %442 = vsyncpa [#allocation5], 1 }
 0x155   :  { %444 = vsyncpa [#allocation5 + $0x1], 1 }

</bundles_post_ra>
